<compile_context>
chip_gen: v5e
topology: v5e:2x2
jax: 0.10.0
libtpu: 0.0.40
codegen_flags: <defaults>
</compile_context>

<pallas_src>
import jax
import jax.numpy as jnp
from jax.experimental import pallas as pl
from jax.experimental.pallas import tpu as pltpu


_H1, _H2 = 64, 32    # true hidden widths of the module


def _round_up(x, m):
    return ((x + m - 1) // m) * m


def _autoencoder_kernel(x_ref,
                        w1_ref, b1_ref,
                        w2_ref, b2_ref,
                        w3_ref, b3_ref,
                        w4_ref, b4_ref,
                        o_ref):
    """Fused forward for one batch tile: 4 matmuls + 3 ReLUs, f32 accumulation."""
    cdt = x_ref.dtype            # compute dtype (f32 or bf16) for MXU inputs
    x = x_ref[...]

    # encoder: Linear(D, 64) -> ReLU
    h = jnp.dot(x, w1_ref[...], preferred_element_type=jnp.float32) + b1_ref[...]
    h = jnp.maximum(h, 0.0).astype(cdt)
    # encoder: Linear(64, 32) -> ReLU
    h = jnp.dot(h, w2_ref[...], preferred_element_type=jnp.float32) + b2_ref[...]
    h = jnp.maximum(h, 0.0).astype(cdt)
    # decoder: Linear(32, 64) -> ReLU
    h = jnp.dot(h, w3_ref[...], preferred_element_type=jnp.float32) + b3_ref[...]
    h = jnp.maximum(h, 0.0).astype(cdt)
    # decoder: Linear(64, D)   (no activation)
    y = jnp.dot(h, w4_ref[...], preferred_element_type=jnp.float32) + b4_ref[...]

    o_ref[...] = y.astype(o_ref.dtype)


def _choose_batch_tile(batch, batch_tile):
    """Multiple-of-8 row tile; capped so large batches get >= 4 grid steps."""
    quarter = _round_up(pl.cdiv(batch, 4), 8)          # 2 steps per v7x TensorCore
    return max(8, min(_round_up(batch_tile, 8), quarter))


def anomaly_detector_forward(x, params, *, batch_tile=4096,
                             compute_dtype=jnp.float32, out_dtype=None):
    """x: (B, input_dim). params: dict of (in, out) weights and (1, out) biases.

    batch_tile: rows per grid step (rounded to a multiple of 8 and capped so the
      grid keeps >= 4 steps for large B).  2048–8192 is a good range on every
      generation; VMEM is not a constraint at these sizes (incl. v7x's 64 MiB).
    compute_dtype: jnp.float32 (exact vs. the PyTorch module) or jnp.bfloat16
      (recommended on v5e, fast everywhere).  Matmul accumulation is always
      f32; biases and ReLU stay in f32.  On the bf16 path x/weights are cast
      once in the wrapper, so input quantization error is included.
    out_dtype: output dtype; defaults to compute_dtype so the bf16 path also
      writes a bf16 output stream (halves the largest HBM write).
    """
    B, D = x.shape
    if out_dtype is None:
        out_dtype = compute_dtype

    bt = _choose_batch_tile(B, batch_tile)
    grid = (pl.cdiv(B, bt),)          # boundary block is clipped; no batch padding

    xc = x if x.dtype == compute_dtype else x.astype(compute_dtype)

    def cast_w(w):
        return w if w.dtype == compute_dtype else w.astype(compute_dtype)

    # Weights kept at true (unpadded) shapes; biases stay f32.
    flat_params = (
        cast_w(params["w1"]), params["b1"].astype(jnp.float32),
        cast_w(params["w2"]), params["b2"].astype(jnp.float32),
        cast_w(params["w3"]), params["b3"].astype(jnp.float32),
        cast_w(params["w4"]), params["b4"].astype(jnp.float32),
    )

    def x_map(i):
        return (i, 0)

    def const_map(i):
        return (0, 0)

    # x/out blocks: last dim = D (== full array dim, so legal even for D=32),
    # second-to-last dim bt is a multiple of 8.  Only the true bytes move.
    in_specs = [pl.BlockSpec((bt, D), x_map)]
    # Resident weights/biases: constant index_map → fetched once, reused across
    # all grid steps.  (pl.Buffered(1) would save a second tiny buffer; skipped
    # for portability — weights total < 100 KB.)
    in_specs += [pl.BlockSpec(p.shape, const_map) for p in flat_params]

    # Honest advisory cost (no padding, so true == actual work/traffic).
    flops = 2 * B * (D * _H1 + _H1 * _H2 + _H2 * _H1 + _H1 * D)
    bytes_accessed = (B * D * xc.dtype.itemsize
                      + B * D * jnp.dtype(out_dtype).itemsize
                      + sum(int(p.size) * p.dtype.itemsize for p in flat_params))
    cost = pl.CostEstimate(flops=int(flops), transcendentals=0,
                           bytes_accessed=int(bytes_accessed))

    return pl.pallas_call(
        _autoencoder_kernel,
        out_shape=jax.ShapeDtypeStruct((B, D), out_dtype),
        grid_spec=pltpu.PrefetchScalarGridSpec(
            num_scalar_prefetch=0,
            grid=grid,
            in_specs=in_specs,
            out_specs=pl.BlockSpec((bt, D), x_map),
        ),
        compiler_params=pltpu.CompilerParams(
            dimension_semantics=("parallel",),
            vmem_limit_bytes=32 * 1024 * 1024),
        cost_estimate=cost,
    )(xc, *flat_params)


def init_params(key, input_dim):
    """Deterministic parameter init mirroring the nn.Linear shapes.

    PyTorch Linear(in, out) stores weight (out, in); we store the transpose
    (in, out) so the kernel does x @ W.
    """
    dims = [(input_dim, _H1), (_H1, _H2), (_H2, _H1), (_H1, input_dim)]
    params = {}
    for idx, (din, dout) in enumerate(dims, start=1):
        key, kw, kb = jax.random.split(key, 3)
        bound = 1.0 / jnp.sqrt(din)
        params[f"w{idx}"] = jax.random.uniform(
            kw, (din, dout), jnp.float32, minval=-bound, maxval=bound)
        params[f"b{idx}"] = jax.random.uniform(
            kb, (1, dout), jnp.float32, minval=-bound, maxval=bound)
    return params


def reference_forward(x, params):
    """Plain-JAX reference for correctness checking."""
    h = jnp.maximum(x @ params["w1"] + params["b1"], 0.0)
    h = jnp.maximum(h @ params["w2"] + params["b2"], 0.0)
    h = jnp.maximum(h @ params["w3"] + params["b3"], 0.0)
    return h @ params["w4"] + params["b4"]


if __name__ == "__main__":
    key = jax.random.PRNGKey(0)
    input_dim = 32

    kp, kx1, kx2 = jax.random.split(key, 3)
    params = init_params(kp, input_dim)

    # Small single-tile case, f32 compute: exact match vs reference.
    x1 = jax.random.normal(kx1, (8, input_dim), jnp.float32)
    out1 = jax.block_until_ready(anomaly_detector_forward(x1, params))
    ref1 = reference_forward(x1, params)
    assert out1.shape == (8, input_dim)
    assert jnp.allclose(out1, ref1, atol=1e-5, rtol=1e-5), "f32 mismatch vs reference"

    # Ragged batch (multi-step grid, clipped boundary block: 100 = 3*32 + 4).
    x2 = jax.random.normal(kx2, (100, input_dim), jnp.float32)
    out2 = jax.block_until_ready(
        anomaly_detector_forward(x2, params, batch_tile=32))
    ref2 = reference_forward(x2, params)
    assert out2.shape == (100, input_dim)
    assert jnp.allclose(out2, ref2, atol=1e-5, rtol=1e-5), "tiled f32 mismatch"

    # bf16 fast path (v5e/v6e/v7x): bf16 inputs/weights/output, f32 accumulation.
    out3 = jax.block_until_ready(
        anomaly_detector_forward(x2, params, batch_tile=32,
                                 compute_dtype=jnp.bfloat16))
    assert out3.dtype == jnp.bfloat16
    assert jnp.allclose(out3.astype(jnp.float32), ref2,
                        atol=5e-2, rtol=5e-2), "bf16 mismatch"

    print("KERNEL_OK")
</pallas_src>

<mosaic_0001>
module attributes {stable_mosaic.version = 11 : i64} {
  func.func @_autoencoder_kernel(%arg0: i32, %arg1: memref<8x32xf32, #tpu.memory_space<vmem>>, %arg2: memref<32x64xf32, #tpu.memory_space<vmem>>, %arg3: memref<1x64xf32, #tpu.memory_space<vmem>>, %arg4: memref<64x32xf32, #tpu.memory_space<vmem>>, %arg5: memref<1x32xf32, #tpu.memory_space<vmem>>, %arg6: memref<32x64xf32, #tpu.memory_space<vmem>>, %arg7: memref<1x64xf32, #tpu.memory_space<vmem>>, %arg8: memref<64x32xf32, #tpu.memory_space<vmem>>, %arg9: memref<1x32xf32, #tpu.memory_space<vmem>>, %arg10: memref<8x32xf32, #tpu.memory_space<vmem>>) attributes {dimension_semantics = [#tpu.dimension_semantics<parallel>], iteration_bounds = array<i64: 1>, scalar_prefetch = 0 : i64, scratch_operands = 0 : i64, tpu.core_type = #tpu.core_type<tc>, window_params = [{transform_indices = @transform_0, window_bounds = array<i64: 8, 32>}, {pipeline_mode = #tpu.pipeline_mode<synchronous>, transform_indices = @transform_1, window_bounds = array<i64: 32, 64>}, {pipeline_mode = #tpu.pipeline_mode<synchronous>, transform_indices = @transform_2, window_bounds = array<i64: 1, 64>}, {pipeline_mode = #tpu.pipeline_mode<synchronous>, transform_indices = @transform_3, window_bounds = array<i64: 64, 32>}, {pipeline_mode = #tpu.pipeline_mode<synchronous>, transform_indices = @transform_4, window_bounds = array<i64: 1, 32>}, {pipeline_mode = #tpu.pipeline_mode<synchronous>, transform_indices = @transform_5, window_bounds = array<i64: 32, 64>}, {pipeline_mode = #tpu.pipeline_mode<synchronous>, transform_indices = @transform_6, window_bounds = array<i64: 1, 64>}, {pipeline_mode = #tpu.pipeline_mode<synchronous>, transform_indices = @transform_7, window_bounds = array<i64: 64, 32>}, {pipeline_mode = #tpu.pipeline_mode<synchronous>, transform_indices = @transform_8, window_bounds = array<i64: 1, 32>}, {transform_indices = @transform_9, window_bounds = array<i64: 8, 32>}]} {
    %c0 = arith.constant 0 : index
    %c0_0 = arith.constant 0 : index
    %0 = vector.load %arg1[%c0, %c0_0] : memref<8x32xf32, #tpu.memory_space<vmem>>, vector<8x32xf32>
    %c0_1 = arith.constant 0 : index
    %c0_2 = arith.constant 0 : index
    %1 = vector.load %arg2[%c0_1, %c0_2] : memref<32x64xf32, #tpu.memory_space<vmem>>, vector<32x64xf32>
    %cst = arith.constant dense<0.000000e+00> : vector<8x64xf32>
    %2 = tpu.matmul %0, %1, %cst {dimension_numbers = #tpu.dot_dimension_numbers<[1], [0], [0], [1], [0, 0, 1, 1], [], []>} : vector<8x32xf32>, vector<32x64xf32>, vector<8x64xf32> -> vector<8x64xf32>
    %c0_3 = arith.constant 0 : index
    %c0_4 = arith.constant 0 : index
    %3 = vector.load %arg3[%c0_3, %c0_4] : memref<1x64xf32, #tpu.memory_space<vmem>>, vector<1x64xf32>
    %4 = vector.broadcast %3 : vector<1x64xf32> to vector<8x64xf32>
    %5 = arith.addf %2, %4 : vector<8x64xf32>
    %cst_5 = arith.constant 0.000000e+00 : f32
    %6 = vector.broadcast %cst_5 : f32 to vector<8x64xf32>
    %7 = arith.maximumf %5, %6 : vector<8x64xf32>
    %c0_6 = arith.constant 0 : index
    %c0_7 = arith.constant 0 : index
    %8 = vector.load %arg4[%c0_6, %c0_7] : memref<64x32xf32, #tpu.memory_space<vmem>>, vector<64x32xf32>
    %cst_8 = arith.constant dense<0.000000e+00> : vector<8x32xf32>
    %9 = tpu.matmul %7, %8, %cst_8 {dimension_numbers = #tpu.dot_dimension_numbers<[1], [0], [0], [1], [0, 0, 1, 1], [], []>} : vector<8x64xf32>, vector<64x32xf32>, vector<8x32xf32> -> vector<8x32xf32>
    %c0_9 = arith.constant 0 : index
    %c0_10 = arith.constant 0 : index
    %10 = vector.load %arg5[%c0_9, %c0_10] : memref<1x32xf32, #tpu.memory_space<vmem>>, vector<1x32xf32>
    %11 = vector.broadcast %10 : vector<1x32xf32> to vector<8x32xf32>
    %12 = arith.addf %9, %11 : vector<8x32xf32>
    %cst_11 = arith.constant 0.000000e+00 : f32
    %13 = vector.broadcast %cst_11 : f32 to vector<8x32xf32>
    %14 = arith.maximumf %12, %13 : vector<8x32xf32>
    %c0_12 = arith.constant 0 : index
    %c0_13 = arith.constant 0 : index
    %15 = vector.load %arg6[%c0_12, %c0_13] : memref<32x64xf32, #tpu.memory_space<vmem>>, vector<32x64xf32>
    %cst_14 = arith.constant dense<0.000000e+00> : vector<8x64xf32>
    %16 = tpu.matmul %14, %15, %cst_14 {dimension_numbers = #tpu.dot_dimension_numbers<[1], [0], [0], [1], [0, 0, 1, 1], [], []>} : vector<8x32xf32>, vector<32x64xf32>, vector<8x64xf32> -> vector<8x64xf32>
    %c0_15 = arith.constant 0 : index
    %c0_16 = arith.constant 0 : index
    %17 = vector.load %arg7[%c0_15, %c0_16] : memref<1x64xf32, #tpu.memory_space<vmem>>, vector<1x64xf32>
    %18 = vector.broadcast %17 : vector<1x64xf32> to vector<8x64xf32>
    %19 = arith.addf %16, %18 : vector<8x64xf32>
    %cst_17 = arith.constant 0.000000e+00 : f32
    %20 = vector.broadcast %cst_17 : f32 to vector<8x64xf32>
    %21 = arith.maximumf %19, %20 : vector<8x64xf32>
    %c0_18 = arith.constant 0 : index
    %c0_19 = arith.constant 0 : index
    %22 = vector.load %arg8[%c0_18, %c0_19] : memref<64x32xf32, #tpu.memory_space<vmem>>, vector<64x32xf32>
    %cst_20 = arith.constant dense<0.000000e+00> : vector<8x32xf32>
    %23 = tpu.matmul %21, %22, %cst_20 {dimension_numbers = #tpu.dot_dimension_numbers<[1], [0], [0], [1], [0, 0, 1, 1], [], []>} : vector<8x64xf32>, vector<64x32xf32>, vector<8x32xf32> -> vector<8x32xf32>
    %c0_21 = arith.constant 0 : index
    %c0_22 = arith.constant 0 : index
    %24 = vector.load %arg9[%c0_21, %c0_22] : memref<1x32xf32, #tpu.memory_space<vmem>>, vector<1x32xf32>
    %25 = vector.broadcast %24 : vector<1x32xf32> to vector<8x32xf32>
    %26 = arith.addf %23, %25 : vector<8x32xf32>
    %c0_23 = arith.constant 0 : index
    %c0_24 = arith.constant 0 : index
    %27 = vector.load %arg10[%c0_23, %c0_24] : memref<8x32xf32, #tpu.memory_space<vmem>>, vector<8x32xf32>
    tpu.vector_store %arg10[%c0_23, %c0_24], %26 {strides = array<i32>} : memref<8x32xf32, #tpu.memory_space<vmem>>, vector<8x32xf32>,
    return
  }
  func.func @transform_0(%arg0: i32) -> (i32, i32) {
    %c0_i32 = arith.constant 0 : i32
    %c0_i32_0 = arith.constant 0 : i32
    return %arg0, %c0_i32 : i32, i32
  }
  func.func @transform_1(%arg0: i32) -> (i32, i32) {
    %c0_i32 = arith.constant 0 : i32
    %c0_i32_0 = arith.constant 0 : i32
    %c0_i32_1 = arith.constant 0 : i32
    return %c0_i32, %c0_i32_0 : i32, i32
  }
  func.func @transform_2(%arg0: i32) -> (i32, i32) {
    %c0_i32 = arith.constant 0 : i32
    %c0_i32_0 = arith.constant 0 : i32
    %c0_i32_1 = arith.constant 0 : i32
    return %c0_i32, %c0_i32_0 : i32, i32
  }
  func.func @transform_3(%arg0: i32) -> (i32, i32) {
    %c0_i32 = arith.constant 0 : i32
    %c0_i32_0 = arith.constant 0 : i32
    %c0_i32_1 = arith.constant 0 : i32
    return %c0_i32, %c0_i32_0 : i32, i32
  }
  func.func @transform_4(%arg0: i32) -> (i32, i32) {
    %c0_i32 = arith.constant 0 : i32
    %c0_i32_0 = arith.constant 0 : i32
    %c0_i32_1 = arith.constant 0 : i32
    return %c0_i32, %c0_i32_0 : i32, i32
  }
  func.func @transform_5(%arg0: i32) -> (i32, i32) {
    %c0_i32 = arith.constant 0 : i32
    %c0_i32_0 = arith.constant 0 : i32
    %c0_i32_1 = arith.constant 0 : i32
    return %c0_i32, %c0_i32_0 : i32, i32
  }
  func.func @transform_6(%arg0: i32) -> (i32, i32) {
    %c0_i32 = arith.constant 0 : i32
    %c0_i32_0 = arith.constant 0 : i32
    %c0_i32_1 = arith.constant 0 : i32
    return %c0_i32, %c0_i32_0 : i32, i32
  }
  func.func @transform_7(%arg0: i32) -> (i32, i32) {
    %c0_i32 = arith.constant 0 : i32
    %c0_i32_0 = arith.constant 0 : i32
    %c0_i32_1 = arith.constant 0 : i32
    return %c0_i32, %c0_i32_0 : i32, i32
  }
  func.func @transform_8(%arg0: i32) -> (i32, i32) {
    %c0_i32 = arith.constant 0 : i32
    %c0_i32_0 = arith.constant 0 : i32
    %c0_i32_1 = arith.constant 0 : i32
    return %c0_i32, %c0_i32_0 : i32, i32
  }
  func.func @transform_9(%arg0: i32) -> (i32, i32) {
    %c0_i32 = arith.constant 0 : i32
    %c0_i32_0 = arith.constant 0 : i32
    return %arg0, %c0_i32 : i32, i32
  }
}

</mosaic_0001>

<bundles_post_ra>
// kernel: tpu_custom_call.1
= control target key start
LH: loop header
LB: loop body
LE: loop exit
PB: predicated region body
PF: predicated region fallthrough
CT: control target
= control target key end

     0   :  { %vm42_vm0 = vcmask 261120   ;;  %s369_s0 = inlined_call_operand.vmem [shape: f32[8,32], index: 0, kind: input, shape index: {}]   ;;  %s370_s1 = inlined_call_operand.vmem [shape: f32[32,64], index: 1, kind: input, shape index: {}]   ;;  %s371_s2 = inlined_call_operand.vmem [shape: f32[1,64], index: 2, kind: input, shape index: {}]   ;;  %s372_s3 = inlined_call_operand.vmem [shape: f32[64,32], index: 3, kind: input, shape index: {}]   ;;  %s373_s4 = inlined_call_operand.vmem [shape: f32[1,32], index: 4, kind: input, shape index: {}]   ;;  %s374_s5 = inlined_call_operand.vmem [shape: f32[32,64], index: 5, kind: input, shape index: {}]   ;;  %s375_s6 = inlined_call_operand.vmem [shape: f32[1,64], index: 6, kind: input, shape index: {}]   ;;  %s376_s7 = inlined_call_operand.vmem [shape: f32[64,32], index: 7, kind: input, shape index: {}]   ;;  %s377_s8 = inlined_call_operand.vmem [shape: f32[1,32], index: 8, kind: input, shape index: {}]   ;;  %s378_s9 = inlined_call_operand.hbm [shape: f32[8,32], index: 9, kind: output, shape index: {}]  }
   0x1   :  { %v37_v0 = vld [vmem:[%s370_s1 + $0x18] sm:$0xff]  ;;  %v36_v1 = vld [vmem:[%s370_s1 + $0x10] sm:$0xff]  ;;  %v35_v3 = vld [vmem:[%s370_s1 + $0x8] sm:$0xff] }
   0x2   :  { %58 = vmatpush.msra.mxu0 %v37_v0  ;;  %v74_v2 = vld [vmem:[%s372_s3 + $0x38] sm:$0xff]  ;;  %v73_v4 = vld [vmem:[%s372_s3 + $0x30] sm:$0xff]  ;;  %v34_v5 = vld [vmem:[%s370_s1] sm:$0xff] }
   0x3   :  { %91 = vmatpush.msra.mxu1 %v74_v2  ;;  %v72_v6 = vld [vmem:[%s372_s3 + $0x28] sm:$0xff]  ;;  %v33_v7 = vld [vmem:[%s369_s0] sm:$0xff] }
   0x4   :  { %59 = vmatpush.msra.mxu0 %v36_v1  ;;  %v71_v8 = vld [vmem:[%s372_s3 + $0x20] sm:$0xff] }
   0x5   :  { %92 = vmatpush.msra.mxu1 %v73_v4 }
   0x6   :  { %60 = vmatpush.msra.mxu0 %v35_v3 }
   0x7   :  { %14 = vsyncpa [#allocation3], 0  ;;  %93 = vmatpush.msra.mxu1 %v72_v6  ;;  %v70_v9 = vld [vmem:[%s372_s3 + $0x18] sm:$0xff]  ;;  %v69_v10 = vld [vmem:[%s372_s3 + $0x10] sm:$0xff]  ;;  %vm79_vm1 = vcmask 523264   ;;  %s223_s17 = smov [#allocation2]  }
   0x8   :  { %61 = vmatpush.msra.mxu0 %v34_v5  ;;  %v68_v11 = vld [vmem:[%s372_s3 + $0x8] sm:$0xff]  ;;  %v67_v12 = vld [vmem:[%s372_s3] sm:$0xff]  ;;  %v107_v13 = vld [vmem:[%s374_s5 + $0x18] sm:$0xff]  ;;  %s177_s3 = sshll.u32 %s223_s17, 4  ;;  %s178_s3 = int_to_ptr.vmem [resolvable:$true] %s177_s3 }
   0x9   :  { %188 = vmatmul.msk.f32.vlgmr.msra.gmra.mxu0 %vm42_vm0, %v33_v7  ;;  %94 = vmatpush.msra.mxu1 %v71_v8  ;;  %v193_v14 = vld [vmem:[%s371_s2] ss:$0 sm:$0xff]  ;;  %v106_v18 = vld [vmem:[%s374_s5 + $0x10] sm:$0xff]  ;;  %v105_v19 = vld [vmem:[%s374_s5 + $0x8] sm:$0xff] }
   0xa   :  { %127 = vmatpush.msra.mxu2 %v107_v13  ;;  %v104_v20 = vld [vmem:[%s374_s5] sm:$0xff]  ;;  %v143_v21 = vld [vmem:[%s376_s7 + $0x38] sm:$0xff]  ;;  %v142_v22 = vld [vmem:[%s376_s7 + $0x30] sm:$0xff] }
   0xb   :  { %95 = vmatpush.msra.mxu1 %v70_v9  ;;  %159 = vmatpush.msra.mxu3 %v143_v21  ;;  %v141_v23 = vld [vmem:[%s376_s7 + $0x28] sm:$0xff]  ;;  %v140_v24 = vld [vmem:[%s376_s7 + $0x20] sm:$0xff]  ;;  %v139_v25 = vld [vmem:[%s376_s7 + $0x18] sm:$0xff] }
   0xc   :  { %128 = vmatpush.msra.mxu2 %v106_v18  ;;  %v194_v26 = vld [vmem:[%s373_s4] ss:$0 sm:$0xff]  ;;  %v138_v30 = vld [vmem:[%s376_s7 + $0x10] sm:$0xff]  ;;  %v137_v31 = vld [vmem:[%s376_s7 + $0x8] sm:$0xff] }
   0xd   :  { %96 = vmatpush.msra.mxu1 %v69_v10  ;;  %160 = vmatpush.msra.mxu3 %v142_v22  ;;  %v136_v32 = vld [vmem:[%s376_s7] sm:$0xff]  ;;  %s179_s7 = sshll.u32 %s378_s9, 4  ;;  %s180_s7 = int_to_ptr.hbm [resolvable:$true] %s179_s7 }
   0xe   :  { %129 = vmatpush.msra.mxu2 %v105_v19  ;;  %v195_v33 = vld [vmem:[%s375_s6] ss:$0 sm:$0xff] }
   0xf   :  { %97 = vmatpush.msra.mxu1 %v68_v11  ;;  %161 = vmatpush.msra.mxu3 %v141_v23  ;;  %v196_v37 = vld [vmem:[%s377_s8] ss:$0 sm:$0xff] }
  0x10   :  { %130 = vmatpush.msra.mxu2 %v104_v20 }
  0x11   :  { %98 = vmatpush.msra.mxu1 %v67_v12  ;;  %162 = vmatpush.msra.mxu3 %v140_v24 }
  0x13   :  { %163 = vmatpush.msra.mxu3 %v139_v25 }
  0x15   :  { %164 = vmatpush.msra.mxu3 %v138_v30 }
  0x17   :  { %165 = vmatpush.msra.mxu3 %v137_v31 }
  0x19   :  { %166 = vmatpush.msra.mxu3 %v136_v32 }
  0x86   :  { %v63_v15 = vpop.f32.mrf.mxu0 }
  0x87   :  { %v64_v16 = vadd.f32 %v193_v14, %v63_v15 }
  0x89   :  { %v66_v17 = vmax.f32 %v64_v16, 0.0 }
  0x8b   :  { %189 = vmatmul.msk.f32.vlgmr.msra.gmra.mxu1 %vm79_vm1, %v66_v17 }
 0x108   :  { %v100_v27 = vpop.f32.mrf.mxu1 }
 0x109   :  { %v101_v28 = vadd.f32 %v194_v26, %v100_v27 }
 0x10b   :  { %v103_v29 = vmax.f32 %v101_v28, 0.0 }
 0x10d   :  { %190 = vmatmul.msk.f32.vlgmr.msra.gmra.mxu2 %vm42_vm0, %v103_v29 }
 0x190   :  { %v132_v34 = vpop.f32.mrf.mxu2 }
 0x191   :  { %v133_v35 = vadd.f32 %v195_v33, %v132_v34 }
 0x193   :  { %v135_v36 = vmax.f32 %v133_v35, 0.0 }
 0x195   :  { %191 = vmatmul.msk.f32.vlgmr.msra.gmra.mxu3 %vm79_vm1, %v135_v36 }
 0x218   :  { %v168_v38 = vpop.f32.mrf.mxu3 }
 0x219   :  { %v169_v39 = vadd.f32 %v196_v37, %v168_v38 }
 0x21b   :  { %171 = vst.msk [vmem:[#allocation2] sm:$0xff] %vm42_vm0, %v169_v39 }
 0x21c   :  { %182 = dma.vmem_to_hbm [thread:$0]  %s178_s3, 128, %s180_s7, [#allocation3]  }
 0x21d   :  { %221 = dma.done.wait [#allocation3], 128  }
 0x21e   :  { %222 = vsyncadd [#allocation3], 4294967168 }
 0x21f   :  { %187 = vsyncpa [#allocation3], 1 }

</bundles_post_ra>
